<compile_context>
chip_gen: v7x
topology: tpu7x:2x2x1
jax: 0.10.0
libtpu: 0.0.40
codegen_flags: <defaults>
</compile_context>

<pallas_src>
import functools

import jax
import jax.numpy as jnp
from jax import lax
from jax.experimental import pallas as pl
from jax.experimental.pallas import tpu as pltpu


# ------------------------------ Pallas kernel ------------------------------ #

def _mha_fused_kernel(x_ref, wqkv_ref, wp_ref, b_ref, o_ref, *,
                      num_heads, head_size, scale):
    """Fused multi-head causal attention + output projection for one batch row.

    x_ref    : (1, T, C)   current batch row
    wqkv_ref : (C, 3*E)    packed columns = [q heads | k heads | v heads], E = H*Hs
    wp_ref   : (E, E)      output projection, already transposed to (in, out)
    b_ref    : (1, E)      output projection bias
    o_ref    : (1, T, E)   final output for this batch row
    """
    H, Hs = num_heads, head_size
    E = H * Hs
    x = x_ref[0]                                    # (T, C)
    T = x.shape[0]

    # Single wide QKV projection: (T, C) @ (C, 3E) -> (T, 3E).
    qkv = jnp.dot(x, wqkv_ref[...], preferred_element_type=jnp.float32)

    # Causal mask, built once per kernel invocation (not per head).
    row = lax.broadcasted_iota(jnp.int32, (T, T), 0)
    col = lax.broadcasted_iota(jnp.int32, (T, T), 1)
    causal = col <= row
    neg = jnp.float32(-1e30)                        # finite: no inf-inf NaN hazard

    dn = (((1,), (1,)), ((), ()))                   # contract last dims (no k.T)

    outs = []
    for h in range(H):                              # unrolled at trace time
        q = qkv[:, h * Hs:(h + 1) * Hs]             # (T, Hs)
        k = qkv[:, E + h * Hs:E + (h + 1) * Hs]     # (T, Hs)
        v = qkv[:, 2 * E + h * Hs:2 * E + (h + 1) * Hs]  # (T, Hs)

        wei = lax.dot_general(q, k, dn, preferred_element_type=jnp.float32)
        wei = wei * scale                           # (T, T), scaled by C**-0.5
        wei = jnp.where(causal, wei, neg)

        # numerically-stable softmax over the last axis (f32 throughout)
        m = jnp.max(wei, axis=-1, keepdims=True)
        e = jnp.exp(wei - m)
        s = jnp.sum(e, axis=-1, keepdims=True)
        p = e / s                                   # (T, T)
        # TODO(synk): attention-dropout is identity here (eval mode).

        outs.append(jnp.dot(p, v, preferred_element_type=jnp.float32))  # (T, Hs)

    # Head concat stays resident in VMEM (never round-trips HBM).
    cat = jnp.concatenate(outs, axis=-1)            # (T, E)

    # Fused output projection; weight pre-transposed on host -> no in-kernel .T
    y = jnp.dot(cat, wp_ref[...], preferred_element_type=jnp.float32)
    y = y + b_ref[...]                              # (T, E) + (1, E)
    o_ref[0] = y.astype(o_ref.dtype)


# ------------------------------ host wrapper ------------------------------- #

def multi_head_attention(x, wq, wk, wv, w_proj, b_proj):
    """x: (B,T,C); wq/wk/wv: (H,C,Hs); w_proj: (E,E) [out,in]; b_proj: (E,).  E = H*Hs = C."""
    B, T, C = x.shape
    H, _, Hs = wq.shape
    E = H * Hs
    scale = float(C) ** -0.5                        # matches torch: C ** (-0.5)

    # One-time host-side weight packing (layout only; no per-step cost).
    def heads_to_cols(w):                           # (H, C, Hs) -> (C, H*Hs)
        return jnp.transpose(w, (1, 0, 2)).reshape(C, H * Hs)

    w_qkv = jnp.concatenate(
        [heads_to_cols(wq), heads_to_cols(wk), heads_to_cols(wv)], axis=-1)  # (C, 3E)
    wp_t = jnp.transpose(w_proj)                    # (in, out): y = cat @ wp_t + b
    b2 = b_proj.reshape(1, E)

    kernel = functools.partial(
        _mha_fused_kernel, num_heads=H, head_size=Hs, scale=scale)

    return pl.pallas_call(
        kernel,
        out_shape=jax.ShapeDtypeStruct((B, T, E), x.dtype),
        grid=(B,),
        in_specs=[
            pl.BlockSpec((1, T, C), lambda b: (b, 0, 0)),      # x row
            pl.BlockSpec((C, 3 * E), lambda b: (0, 0)),        # packed QKV weights
            pl.BlockSpec((E, E), lambda b: (0, 0)),            # proj weight (pre-T)
            pl.BlockSpec((1, E), lambda b: (0, 0)),            # proj bias
        ],
        out_specs=pl.BlockSpec((1, T, E), lambda b: (b, 0, 0)),
        compiler_params=pltpu.CompilerParams(
            dimension_semantics=("parallel",)),                # B>=2 feeds both v7x TCs
    )(x, w_qkv, wp_t, b2)


# --------------------------- pure-JAX reference ---------------------------- #

def _reference(x, wq, wk, wv, w_proj, b_proj):
    B, T, C = x.shape
    H = wq.shape[0]
    outs = []
    for h in range(H):
        q = x @ wq[h]
        k = x @ wk[h]
        v = x @ wv[h]
        wei = (q @ jnp.swapaxes(k, -1, -2)) * (C ** -0.5)
        mask = jnp.tril(jnp.ones((T, T), dtype=bool))
        wei = jnp.where(mask, wei, -jnp.inf)
        wei = jax.nn.softmax(wei, axis=-1)
        outs.append(wei @ v)
    cat = jnp.concatenate(outs, axis=-1)
    return cat @ w_proj.T + b_proj


# ---------------------------------- main ----------------------------------- #

if __name__ == "__main__":
    # small shapes consistent with the module
    B = 2            # batch
    T = 8            # sequence length (== block_size)
    n_embd = 32      # embedding dim C
    num_heads = 4
    head_size = n_embd // num_heads   # 8

    key = jax.random.PRNGKey(0)
    kx, kq, kk, kv, kw, kb = jax.random.split(key, 6)

    x = jax.random.normal(kx, (B, T, n_embd), dtype=jnp.float32)

    # Deterministic init mimicking PyTorch Linear default: U(-1/sqrt(fan_in), 1/sqrt(fan_in))
    bound_qkv = 1.0 / (n_embd ** 0.5)
    wq = jax.random.uniform(kq, (num_heads, n_embd, head_size),
                            minval=-bound_qkv, maxval=bound_qkv, dtype=jnp.float32)
    wk = jax.random.uniform(kk, (num_heads, n_embd, head_size),
                            minval=-bound_qkv, maxval=bound_qkv, dtype=jnp.float32)
    wv = jax.random.uniform(kv, (num_heads, n_embd, head_size),
                            minval=-bound_qkv, maxval=bound_qkv, dtype=jnp.float32)

    bound_p = 1.0 / (n_embd ** 0.5)
    w_proj = jax.random.uniform(kw, (n_embd, n_embd),
                                minval=-bound_p, maxval=bound_p, dtype=jnp.float32)
    b_proj = jax.random.uniform(kb, (n_embd,),
                                minval=-bound_p, maxval=bound_p, dtype=jnp.float32)

    out = multi_head_attention(x, wq, wk, wv, w_proj, b_proj)
    out = jax.block_until_ready(out)

    ref = _reference(x, wq, wk, wv, w_proj, b_proj)
    assert out.shape == (B, T, n_embd), out.shape
    assert jnp.allclose(out, ref, atol=1e-4, rtol=1e-4), "mismatch vs reference"

    print("KERNEL_OK")
</pallas_src>

<mosaic_0001>
module attributes {stable_mosaic.version = 11 : i64} {
  func.func @_mha_fused_kernel(%arg0: i32, %arg1: memref<1x8x32xf32, #tpu.memory_space<vmem>>, %arg2: memref<32x96xf32, #tpu.memory_space<vmem>>, %arg3: memref<32x32xf32, #tpu.memory_space<vmem>>, %arg4: memref<1x32xf32, #tpu.memory_space<vmem>>, %arg5: memref<1x8x32xf32, #tpu.memory_space<vmem>>) attributes {dimension_semantics = [#tpu.dimension_semantics<parallel>], iteration_bounds = array<i64: 2>, scalar_prefetch = 0 : i64, scratch_operands = 0 : i64, tpu.core_type = #tpu.core_type<tc>, window_params = [{transform_indices = @transform_0, window_bounds = array<i64: 1, 8, 32>}, {pipeline_mode = #tpu.pipeline_mode<synchronous>, transform_indices = @transform_1, window_bounds = array<i64: 32, 96>}, {pipeline_mode = #tpu.pipeline_mode<synchronous>, transform_indices = @transform_2, window_bounds = array<i64: 32, 32>}, {pipeline_mode = #tpu.pipeline_mode<synchronous>, transform_indices = @transform_3, window_bounds = array<i64: 1, 32>}, {transform_indices = @transform_4, window_bounds = array<i64: 1, 8, 32>}]} {
    %c0 = arith.constant 0 : index
    %c0_0 = arith.constant 0 : index
    %c0_1 = arith.constant 0 : index
    %0 = vector.load %arg1[%c0, %c0_0, %c0_1] : memref<1x8x32xf32, #tpu.memory_space<vmem>>, vector<1x8x32xf32>
    %1 = vector.shape_cast %0 : vector<1x8x32xf32> to vector<8x32xf32>
    %c0_2 = arith.constant 0 : index
    %c0_3 = arith.constant 0 : index
    %2 = vector.load %arg2[%c0_2, %c0_3] : memref<32x96xf32, #tpu.memory_space<vmem>>, vector<32x96xf32>
    %cst = arith.constant dense<0.000000e+00> : vector<8x96xf32>
    %3 = tpu.matmul %1, %2, %cst {dimension_numbers = #tpu.dot_dimension_numbers<[1], [0], [0], [1], [0, 0, 1, 1], [], []>} : vector<8x32xf32>, vector<32x96xf32>, vector<8x96xf32> -> vector<8x96xf32>
    %4 = tpu.iota {dimensions = array<i32: 0>} : vector<8x8xi32>
    %5 = tpu.iota {dimensions = array<i32: 1>} : vector<8x8xi32>
    %6 = arith.cmpi sle, %5, %4 : vector<8x8xi32>
    %7 = vector.extract_strided_slice %3 {offsets = [0, 0], sizes = [8, 8], strides = [1, 1]} : vector<8x96xf32> to vector<8x8xf32>
    %8 = vector.extract_strided_slice %3 {offsets = [0, 32], sizes = [8, 8], strides = [1, 1]} : vector<8x96xf32> to vector<8x8xf32>
    %9 = vector.extract_strided_slice %3 {offsets = [0, 64], sizes = [8, 8], strides = [1, 1]} : vector<8x96xf32> to vector<8x8xf32>
    %cst_4 = arith.constant dense<0.000000e+00> : vector<8x8xf32>
    %10 = tpu.matmul %7, %8, %cst_4 {dimension_numbers = #tpu.dot_dimension_numbers<[1], [1], [0], [0], [0, 0, 1, 0], [], []>} : vector<8x8xf32>, vector<8x8xf32>, vector<8x8xf32> -> vector<8x8xf32>
    %cst_5 = arith.constant 0.176776692 : f32
    %11 = vector.broadcast %cst_5 : f32 to vector<8x8xf32>
    %12 = arith.mulf %10, %11 : vector<8x8xf32>
    %cst_6 = arith.constant -1.000000e+30 : f32
    %13 = vector.broadcast %cst_6 : f32 to vector<8x8xf32>
    %14 = arith.select %6, %12, %13 : vector<8x8xi1>, vector<8x8xf32>
    %cst_7 = arith.constant dense<0xFF800000> : vector<8xf32>
    %15 = vector.multi_reduction <maximumf>, %14, %cst_7 [1] : vector<8x8xf32> to vector<8xf32>
    %16 = vector.shape_cast %15 : vector<8xf32> to vector<8x1xf32>
    %17 = vector.broadcast %16 : vector<8x1xf32> to vector<8x8xf32>
    %18 = arith.subf %14, %17 : vector<8x8xf32>
    %19 = math.exp %18 : vector<8x8xf32>
    %cst_8 = arith.constant dense<0.000000e+00> : vector<8xf32>
    %20 = vector.multi_reduction <add>, %19, %cst_8 [1] : vector<8x8xf32> to vector<8xf32>
    %21 = vector.shape_cast %20 : vector<8xf32> to vector<8x1xf32>
    %22 = vector.broadcast %21 : vector<8x1xf32> to vector<8x8xf32>
    %23 = arith.divf %19, %22 : vector<8x8xf32>
    %cst_9 = arith.constant dense<0.000000e+00> : vector<8x8xf32>
    %24 = tpu.matmul %23, %9, %cst_9 {dimension_numbers = #tpu.dot_dimension_numbers<[1], [0], [0], [1], [0, 0, 1, 1], [], []>} : vector<8x8xf32>, vector<8x8xf32>, vector<8x8xf32> -> vector<8x8xf32>
    %25 = vector.extract_strided_slice %3 {offsets = [0, 8], sizes = [8, 8], strides = [1, 1]} : vector<8x96xf32> to vector<8x8xf32>
    %26 = vector.extract_strided_slice %3 {offsets = [0, 40], sizes = [8, 8], strides = [1, 1]} : vector<8x96xf32> to vector<8x8xf32>
    %27 = vector.extract_strided_slice %3 {offsets = [0, 72], sizes = [8, 8], strides = [1, 1]} : vector<8x96xf32> to vector<8x8xf32>
    %cst_10 = arith.constant dense<0.000000e+00> : vector<8x8xf32>
    %28 = tpu.matmul %25, %26, %cst_10 {dimension_numbers = #tpu.dot_dimension_numbers<[1], [1], [0], [0], [0, 0, 1, 0], [], []>} : vector<8x8xf32>, vector<8x8xf32>, vector<8x8xf32> -> vector<8x8xf32>
    %cst_11 = arith.constant 0.176776692 : f32
    %29 = vector.broadcast %cst_11 : f32 to vector<8x8xf32>
    %30 = arith.mulf %28, %29 : vector<8x8xf32>
    %cst_12 = arith.constant -1.000000e+30 : f32
    %31 = vector.broadcast %cst_12 : f32 to vector<8x8xf32>
    %32 = arith.select %6, %30, %31 : vector<8x8xi1>, vector<8x8xf32>
    %cst_13 = arith.constant dense<0xFF800000> : vector<8xf32>
    %33 = vector.multi_reduction <maximumf>, %32, %cst_13 [1] : vector<8x8xf32> to vector<8xf32>
    %34 = vector.shape_cast %33 : vector<8xf32> to vector<8x1xf32>
    %35 = vector.broadcast %34 : vector<8x1xf32> to vector<8x8xf32>
    %36 = arith.subf %32, %35 : vector<8x8xf32>
    %37 = math.exp %36 : vector<8x8xf32>
    %cst_14 = arith.constant dense<0.000000e+00> : vector<8xf32>
    %38 = vector.multi_reduction <add>, %37, %cst_14 [1] : vector<8x8xf32> to vector<8xf32>
    %39 = vector.shape_cast %38 : vector<8xf32> to vector<8x1xf32>
    %40 = vector.broadcast %39 : vector<8x1xf32> to vector<8x8xf32>
    %41 = arith.divf %37, %40 : vector<8x8xf32>
    %cst_15 = arith.constant dense<0.000000e+00> : vector<8x8xf32>
    %42 = tpu.matmul %41, %27, %cst_15 {dimension_numbers = #tpu.dot_dimension_numbers<[1], [0], [0], [1], [0, 0, 1, 1], [], []>} : vector<8x8xf32>, vector<8x8xf32>, vector<8x8xf32> -> vector<8x8xf32>
    %43 = vector.extract_strided_slice %3 {offsets = [0, 16], sizes = [8, 8], strides = [1, 1]} : vector<8x96xf32> to vector<8x8xf32>
    %44 = vector.extract_strided_slice %3 {offsets = [0, 48], sizes = [8, 8], strides = [1, 1]} : vector<8x96xf32> to vector<8x8xf32>
    %45 = vector.extract_strided_slice %3 {offsets = [0, 80], sizes = [8, 8], strides = [1, 1]} : vector<8x96xf32> to vector<8x8xf32>
    %cst_16 = arith.constant dense<0.000000e+00> : vector<8x8xf32>
    %46 = tpu.matmul %43, %44, %cst_16 {dimension_numbers = #tpu.dot_dimension_numbers<[1], [1], [0], [0], [0, 0, 1, 0], [], []>} : vector<8x8xf32>, vector<8x8xf32>, vector<8x8xf32> -> vector<8x8xf32>
    %cst_17 = arith.constant 0.176776692 : f32
    %47 = vector.broadcast %cst_17 : f32 to vector<8x8xf32>
    %48 = arith.mulf %46, %47 : vector<8x8xf32>
    %cst_18 = arith.constant -1.000000e+30 : f32
    %49 = vector.broadcast %cst_18 : f32 to vector<8x8xf32>
    %50 = arith.select %6, %48, %49 : vector<8x8xi1>, vector<8x8xf32>
    %cst_19 = arith.constant dense<0xFF800000> : vector<8xf32>
    %51 = vector.multi_reduction <maximumf>, %50, %cst_19 [1] : vector<8x8xf32> to vector<8xf32>
    %52 = vector.shape_cast %51 : vector<8xf32> to vector<8x1xf32>
    %53 = vector.broadcast %52 : vector<8x1xf32> to vector<8x8xf32>
    %54 = arith.subf %50, %53 : vector<8x8xf32>
    %55 = math.exp %54 : vector<8x8xf32>
    %cst_20 = arith.constant dense<0.000000e+00> : vector<8xf32>
    %56 = vector.multi_reduction <add>, %55, %cst_20 [1] : vector<8x8xf32> to vector<8xf32>
    %57 = vector.shape_cast %56 : vector<8xf32> to vector<8x1xf32>
    %58 = vector.broadcast %57 : vector<8x1xf32> to vector<8x8xf32>
    %59 = arith.divf %55, %58 : vector<8x8xf32>
    %cst_21 = arith.constant dense<0.000000e+00> : vector<8x8xf32>
    %60 = tpu.matmul %59, %45, %cst_21 {dimension_numbers = #tpu.dot_dimension_numbers<[1], [0], [0], [1], [0, 0, 1, 1], [], []>} : vector<8x8xf32>, vector<8x8xf32>, vector<8x8xf32> -> vector<8x8xf32>
    %61 = vector.extract_strided_slice %3 {offsets = [0, 24], sizes = [8, 8], strides = [1, 1]} : vector<8x96xf32> to vector<8x8xf32>
    %62 = vector.extract_strided_slice %3 {offsets = [0, 56], sizes = [8, 8], strides = [1, 1]} : vector<8x96xf32> to vector<8x8xf32>
    %63 = vector.extract_strided_slice %3 {offsets = [0, 88], sizes = [8, 8], strides = [1, 1]} : vector<8x96xf32> to vector<8x8xf32>
    %cst_22 = arith.constant dense<0.000000e+00> : vector<8x8xf32>
    %64 = tpu.matmul %61, %62, %cst_22 {dimension_numbers = #tpu.dot_dimension_numbers<[1], [1], [0], [0], [0, 0, 1, 0], [], []>} : vector<8x8xf32>, vector<8x8xf32>, vector<8x8xf32> -> vector<8x8xf32>
    %cst_23 = arith.constant 0.176776692 : f32
    %65 = vector.broadcast %cst_23 : f32 to vector<8x8xf32>
    %66 = arith.mulf %64, %65 : vector<8x8xf32>
    %cst_24 = arith.constant -1.000000e+30 : f32
    %67 = vector.broadcast %cst_24 : f32 to vector<8x8xf32>
    %68 = arith.select %6, %66, %67 : vector<8x8xi1>, vector<8x8xf32>
    %cst_25 = arith.constant dense<0xFF800000> : vector<8xf32>
    %69 = vector.multi_reduction <maximumf>, %68, %cst_25 [1] : vector<8x8xf32> to vector<8xf32>
    %70 = vector.shape_cast %69 : vector<8xf32> to vector<8x1xf32>
    %71 = vector.broadcast %70 : vector<8x1xf32> to vector<8x8xf32>
    %72 = arith.subf %68, %71 : vector<8x8xf32>
    %73 = math.exp %72 : vector<8x8xf32>
    %cst_26 = arith.constant dense<0.000000e+00> : vector<8xf32>
    %74 = vector.multi_reduction <add>, %73, %cst_26 [1] : vector<8x8xf32> to vector<8xf32>
    %75 = vector.shape_cast %74 : vector<8xf32> to vector<8x1xf32>
    %76 = vector.broadcast %75 : vector<8x1xf32> to vector<8x8xf32>
    %77 = arith.divf %73, %76 : vector<8x8xf32>
    %cst_27 = arith.constant dense<0.000000e+00> : vector<8x8xf32>
    %78 = tpu.matmul %77, %63, %cst_27 {dimension_numbers = #tpu.dot_dimension_numbers<[1], [0], [0], [1], [0, 0, 1, 1], [], []>} : vector<8x8xf32>, vector<8x8xf32>, vector<8x8xf32> -> vector<8x8xf32>
    %79 = tpu.concatenate %24, %42, %60, %78 in 1 : vector<8x8xf32>, vector<8x8xf32>, vector<8x8xf32>, vector<8x8xf32> -> vector<8x32xf32>
    %c0_28 = arith.constant 0 : index
    %c0_29 = arith.constant 0 : index
    %80 = vector.load %arg3[%c0_28, %c0_29] : memref<32x32xf32, #tpu.memory_space<vmem>>, vector<32x32xf32>
    %cst_30 = arith.constant dense<0.000000e+00> : vector<8x32xf32>
    %81 = tpu.matmul %79, %80, %cst_30 {dimension_numbers = #tpu.dot_dimension_numbers<[1], [0], [0], [1], [0, 0, 1, 1], [], []>} : vector<8x32xf32>, vector<32x32xf32>, vector<8x32xf32> -> vector<8x32xf32>
    %c0_31 = arith.constant 0 : index
    %c0_32 = arith.constant 0 : index
    %82 = vector.load %arg4[%c0_31, %c0_32] : memref<1x32xf32, #tpu.memory_space<vmem>>, vector<1x32xf32>
    %83 = vector.broadcast %82 : vector<1x32xf32> to vector<8x32xf32>
    %84 = arith.addf %81, %83 : vector<8x32xf32>
    %c0_33 = arith.constant 0 : index
    %c0_34 = arith.constant 0 : index
    %c0_35 = arith.constant 0 : index
    %85 = vector.load %arg5[%c0_33, %c0_34, %c0_35] : memref<1x8x32xf32, #tpu.memory_space<vmem>>, vector<1x8x32xf32>
    %86 = vector.shape_cast %85 : vector<1x8x32xf32> to vector<8x32xf32>
    %87 = vector.shape_cast %84 : vector<8x32xf32> to vector<1x8x32xf32>
    tpu.vector_store %arg5[%c0_33, %c0_34, %c0_35], %87 {strides = array<i32>} : memref<1x8x32xf32, #tpu.memory_space<vmem>>, vector<1x8x32xf32>,
    return
  }
  func.func @transform_0(%arg0: i32) -> (i32, i32, i32) {
    %c0_i32 = arith.constant 0 : i32
    %c0_i32_0 = arith.constant 0 : i32
    %c0_i32_1 = arith.constant 0 : i32
    return %arg0, %c0_i32, %c0_i32_0 : i32, i32, i32
  }
  func.func @transform_1(%arg0: i32) -> (i32, i32) {
    %c0_i32 = arith.constant 0 : i32
    %c0_i32_0 = arith.constant 0 : i32
    %c0_i32_1 = arith.constant 0 : i32
    return %c0_i32, %c0_i32_0 : i32, i32
  }
  func.func @transform_2(%arg0: i32) -> (i32, i32) {
    %c0_i32 = arith.constant 0 : i32
    %c0_i32_0 = arith.constant 0 : i32
    %c0_i32_1 = arith.constant 0 : i32
    return %c0_i32, %c0_i32_0 : i32, i32
  }
  func.func @transform_3(%arg0: i32) -> (i32, i32) {
    %c0_i32 = arith.constant 0 : i32
    %c0_i32_0 = arith.constant 0 : i32
    %c0_i32_1 = arith.constant 0 : i32
    return %c0_i32, %c0_i32_0 : i32, i32
  }
  func.func @transform_4(%arg0: i32) -> (i32, i32, i32) {
    %c0_i32 = arith.constant 0 : i32
    %c0_i32_0 = arith.constant 0 : i32
    %c0_i32_1 = arith.constant 0 : i32
    return %arg0, %c0_i32, %c0_i32_0 : i32, i32, i32
  }
}

</mosaic_0001>

<bundles_post_ra>
// kernel: tpu_custom_call.1
= control target key start
LH: loop header
LB: loop body
LE: loop exit
PB: predicated region body
PF: predicated region fallthrough
CT: control target
= control target key end

     0   :  { %9 = vsyncpa [#allocation3], 0  ;;  %s1951_s0 = inlined_call_operand.hbm [shape: f32[2,8,32], index: 0, kind: input, shape index: {}]   ;;  %s1952_s1 = inlined_call_operand.hbm [shape: f32[32,96], index: 1, kind: input, shape index: {}]   ;;  %s1953_s2 = inlined_call_operand.hbm [shape: f32[32,32], index: 2, kind: input, shape index: {}]   ;;  %s1954_s3 = inlined_call_operand.vmem [shape: f32[1,32], index: 3, kind: input, shape index: {}]   ;;  %s1955_s4 = inlined_call_operand.hbm [shape: f32[2,8,32], index: 4, kind: output, shape index: {}]  }
   0x1   :  { %11 = vsyncpa [#allocation3 + $0x1], 0 }
   0x2   :  { %12 = vsyncpa [#allocation6], 0 }
   0x3   :  { %13 = vsyncpa [#allocation4], 0 }
   0x4   :  { %15 = vsyncpa [#allocation4 + $0x1], 0  ;;  %s1638_s15 = smov 0   ;;  %s1640_s16 = smov 0  }
   0x5   :  { %s1642_s17 = smov 0   ;;  %s1644_s18 = smov 0  }
   0x6 LB: > { %s1659_s19 = sadd.s32 4294967295, %s1588_s18   ;;  %s1199_s20 = sadd.s32 4294967294, %s1588_s18   ;;  %s1588_s18 = sphi %s1644_s18, %s1975_s18   ;;  %s1584_s17 = sphi %s1642_s17, %s1974_s17   ;;  %s1580_s16 = sphi %s1640_s16, %s1973_s16   ;;  %s1576_s15 = sphi %s1638_s15, %s1972_s15  }
   0x7   : > { %p41_p0 = scmp.ne.s32.totalorder %s1580_s16, %s1576_s15  ;;  %p1956_p1 = scmp.eq.s32.totalorder %s1659_s19, 0 }
   0x8   : > { %p134_p3 = scmp.eq.s32.totalorder %s1199_s20, 1  ;;  %p1200_p5 = scmp.ge.s32.totalorder %s1588_s18, 1 }
   0x9   : > { %p1668_p4 = por %p1956_p1, %p41_p0  ;;  %p141_p7 = scmp.lt.s32.totalorder %s1588_s18, 3 }
   0xa   : > { %p1673_p6 = por %p134_p3, %p41_p0  ;;  %s1590_s24 = smov [#allocation5]  }
   0xb   : > { %s1959_s21 = scalar_select %p1668_p4, 1, 0 }
   0xc   : > { %s1960_s22 = scalar_select %p1673_p6, 1, 0 }
   0xd   : > { %p1678_p8 = pnand %p1200_p5, %p141_p7  ;;  %s153_s25 = sshll.u32 %s1590_s24, 4  ;;  %s1682_s25 = int_to_ptr.vmem [resolvable:$true] %s153_s25 }
   0xe   : > { %s1591_s27 = smov [#allocation7]   ;;  %s1432_s5 = scalar_lea.hbm %s1952_s1, 512 }
   0xf   : > { %p1342_p9 = pneg %p1678_p8  ;;  %s166_s28 = sshll.u32 %s1591_s27, 4  ;;  %s1693_s28 = int_to_ptr.vmem [resolvable:$true] %s166_s28 }
  0x10   : > { %p1433_p12 = scmp.ne.s32.totalorder %s1952_s1, %s1432_s5  ;;  %p1439_p5 = scmp.lt.u32.totalorder %s1432_s5, %s1952_s1 }
  0x11   : > { %p1689_p11 = pnand %p1342_p9, %p1956_p1 }
  0x13   : > { %p1434_p13 = pneg %p1689_p11 }
  0x15   : > { %p1435_p0 = pnand %p1434_p13, %p1433_p12 }
  0x17   : > { %p1436_p3 = pneg %p1435_p0 }
  0x19   : > { %p1441_p7 = pnand %p1439_p5, %p1436_p3 }
  0x1b   : > { %1444 = shalt.err (!%p1441_p7)
}
  0x1c   : > { %s1445_s10 = scalar_lea.vmem %s1682_s25, 512  ;;  %p1453_p2 = scmp.lt.s32.totalorder %s1682_s25, %s1682_s25 }
  0x1d   : > { %p1446_p9 = scmp.ne.s32.totalorder %s1682_s25, %s1445_s10  ;;  %p1454_p12 = scmp.lt.s32.totalorder %s1445_s10, %s1445_s10 }
  0x1f   : > { %p1448_p10 = pnand %p1446_p9, %p1434_p13  ;;  %p1455_p0 = por %p1454_p12, %p1453_p2 }
  0x21   : > { %p1449_p1 = pneg %p1448_p10 }
  0x23   : > { %p1456_p6 = pnand %p1455_p0, %p1449_p1 }
  0x25   : > { %1459 = shalt.err (!%p1456_p6)
}
  0x26   : > { %s1592_s11 = smov 128   ;;  %s1593_s12 = smov 8  }
  0x27   : > { %1345 = dma.hbm_to_vmem [thread:$0]  (!%p1689_p11), %s1952_s1, 512, %s1682_s25, [#allocation6], %s1592_s11, %s1592_s11, %s1593_s12  }
  0x28   : > { %s1460_s27 = scalar_lea.hbm %s1953_s2, 512 }
  0x29   : > { %p1461_p2 = scmp.ne.s32.totalorder %s1953_s2, %s1460_s27  ;;  %p1467_p10 = scmp.lt.u32.totalorder %s1460_s27, %s1953_s2 }
  0x2b   : > { %p1463_p1 = pnand %p1461_p2, %p1434_p13 }
  0x2d   : > { %p1464_p6 = pneg %p1463_p1 }
  0x2f   : > { %p1469_p3 = pnand %p1467_p10, %p1464_p6 }
  0x31   : > { %1472 = shalt.err (!%p1469_p3)
}
  0x32   : > { %s1473_s25 = scalar_lea.vmem %s1693_s28, 512  ;;  %p1481_p12 = scmp.lt.s32.totalorder %s1693_s28, %s1693_s28 }
  0x33   : > { %p1474_p5 = scmp.ne.s32.totalorder %s1693_s28, %s1473_s25  ;;  %p1482_p0 = scmp.lt.s32.totalorder %s1473_s25, %s1473_s25 }
  0x35   : > { %p1476_p7 = pnand %p1474_p5, %p1434_p13  ;;  %p1483_p2 = por %p1482_p0, %p1481_p12 }
  0x37   : > { %p1477_p9 = pneg %p1476_p7 }
  0x39   : > { %p1484_p1 = pnand %p1483_p2, %p1477_p9 }
  0x3b   : > { %1487 = shalt.err (!%p1484_p1)
}
  0x3c   : > { %1348 = dma.hbm_to_vmem [thread:$0]  (!%p1689_p11), %s1953_s2, 512, %s1693_s28, [#allocation6], %s1592_s11, %s1592_s11, %s1593_s12  }
  0x3d   : > { %s1748_s9 = sadd.s32 1, %s1588_s18   ;;  %s28_s26 = sadd.s32 1, %s1584_s17 }
  0x3e   : > { %s25_s10 = ssub.s32 %s1588_s18, %s1748_s9  ;;  %p35_p13 = scmp.ne.s32.totalorder %s1584_s17, %s1580_s16 }
  0x3f   : > { %p26_p6 = scmp.eq.s32.totalorder %s25_s10, 0  ;;  %p36_p10 = scmp.eq.s32.totalorder %s1588_s18, 0 }
  0x40   : > { %p1963_p3 = scmp.eq.s32.totalorder %s1659_s19, 1  ;;  %p1359_p7 = scmp.lt.s32.totalorder %s1588_s18, 2 }
  0x41   : > { %s1764_s14 = scalar_select %p26_p6, %s1584_s17, %s28_s26  }
  0x42   : > { %p1758_p5 = por %p1963_p3, %p35_p13  ;;  %p37_p9 = por %p36_p10, %p35_p13 }
  0x43   : > { %s183_s20 = sand.u32 1, %s1584_s17   ;;  %s1205_s28 = sshll.u32 %s1588_s18, 7 }
  0x44   : > { %s1964_s13 = scalar_select %p1758_p5, 1, 0 }
  0x45   : > { %s1204_s24 = sshll.u32 %s183_s20, 3  ;;  %s1771_s27 = scalar_lea.hbm %s1951_s0, %s1205_s28 }
  0x46   : > { %s187_s29 = scalar_lea.vmem [#allocation2], %s1204_s24  ;;  %p1775_p11 = pnand %p1359_p7, %p37_p9 }
  0x47   : > { %s194_s30 = sshll.u32 %s187_s29, 4  ;;  %s184_s6 = scalar_lea.sflag [#allocation3], %s183_s20  ;;  %s1773_s30 = int_to_ptr.vmem [resolvable:$true] %s194_s30 }
  0x48   : > { %s1488_s25 = scalar_lea.hbm %s1771_s27, 128  ;;  %p1490_p0 = pneg %p1775_p11 }
  0x49   : > { %p1489_p12 = scmp.ne.s32.totalorder %s1771_s27, %s1488_s25  ;;  %s1493_s26 = scalar_lea.hbm %s1951_s0, 256 }
  0x4a   : > { %p1494_p13 = scmp.lt.u32.totalorder %s1771_s27, %s1951_s0  ;;  %p1495_p6 = scmp.lt.u32.totalorder %s1493_s26, %s1488_s25 }
  0x4b   : > { %p1491_p2 = pnand %p1490_p0, %p1489_p12  ;;  %p1497_p3 = scmp.lt.u32.totalorder %s1488_s25, %s1771_s27 }
  0x4c   : > { %p1496_p10 = por %p1495_p6, %p1494_p13 }
  0x4d   : > { %p1492_p1 = pneg %p1491_p2 }
  0x4e   : > { %p1498_p7 = por %p1497_p3, %p1496_p10 }
  0x50   : > { %p1499_p9 = pnand %p1498_p7, %p1492_p1 }
  0x52   : > { %1502 = shalt.err (!%p1499_p9)
}
  0x53   : > { %s1503_s20 = scalar_lea.vmem %s1773_s30, 128  ;;  %s1594_s28 = smov [#allocation2]  }
  0x54   : > { %p1504_p12 = scmp.ne.s32.totalorder %s1773_s30, %s1503_s20  ;;  %s1508_s11 = sshll.u32 %s1594_s28, 4  ;;  %s1509_s11 = int_to_ptr.vmem [resolvable:$false] %s1508_s11 }
  0x55   : > { %s1510_s12 = scalar_lea.vmem %s1509_s11, 256  ;;  %p1511_p4 = scmp.lt.s32.totalorder %s1773_s30, %s1509_s11 }
  0x56   : > { %p1506_p2 = pnand %p1504_p12, %p1490_p0  ;;  %p1512_p13 = scmp.lt.s32.totalorder %s1510_s12, %s1503_s20 }
  0x58   : > { %p1507_p5 = pneg %p1506_p2  ;;  %p1513_p6 = por %p1512_p13, %p1511_p4 }
  0x5a   : > { %p1514_p10 = pnand %p1513_p6, %p1507_p5 }
  0x5c   : > { %1517 = shalt.err (!%p1514_p10)
}
  0x5d   : > { %1352 = dma.hbm_to_vmem [thread:$0]  (!%p1775_p11), %s1771_s27, 128, %s1773_s30, %s184_s6  }
  0x5e   : > { %203 = sbr.rel (%p1678_p8) target bundleno = 2111 (0x83f), region = 36  ;;  %s1807_s29 = sand.u32 (!%p1678_p8), 1, %s1580_s16  }
  0x5f   : > { %s1207_s25 = sshll.u32 (!%p1678_p8), %s1807_s29, 3  ;;  %s206_s7 = scalar_lea.sflag (!%p1678_p8), [#allocation3], %s1807_s29 }
  0x60   : > { %s209_s8 = scalar_lea.vmem (!%p1678_p8), [#allocation2], %s1207_s25  ;;  %p1966_p4 = scmp.ne.s32.totalorder (!%p1678_p8), %s1959_s21, 0 }
  0x65   : > { %1563 = dma.done.wait (%p1966_p4), %s206_s7, 128  }
  0x66   : > { %1565 = vsyncadd (%p1966_p4), %s206_s7, 4294967168  ;;  %p1967_p5 = scmp.eq.s32.totalorder %s1659_s19, 0 }
  0x68   : > { %1567 = dma.done.wait (%p1967_p5), [#allocation6], 1024   ;;  %p1968_p8 = pmov %p1967_p5 }
  0x69   : > { %v1595_v0 = vmov 0.0|0.0   ;;  %vm1596_vm0 = vmmov 0   ;;  %v1597_v1 = vmov 0.0   ;;  %v243_v2 = vld [vmem:[#allocation5] sm:$0xff]  ;;  %v244_v3 = vld [vmem:[#allocation5 + $0x8] sm:$0xff]  ;;  %v245_v4 = vld [vmem:[#allocation5 + $0x10] sm:$0xff]  ;;  %v321_v16 = vlaneseq }
  0x6a   : > { %1569 = vsyncadd (%p1968_p8), [#allocation6], 4294966272  ;;  %1318 = vmatprep.subr.bf16.mxu0 %v1595_v0  ;;  %1264 = vmatprep.mubr.msk.f32.mxu0 %vm1596_vm0, %v1597_v1  ;;  %v1319_v5 = vpack.c.bf16 %v244_v3, %v243_v2  ;;  %v246_v6 = vld [vmem:[#allocation5 + $0x18] sm:$0xff]  ;;  %vm247_vm1 = vcmask 261120   ;;  %s1598_s21 = smov 64   ;;  %s1599_s23 = smov 96  }
  0x6b   : > { %1267 = vmatprep.subr.mxu1 %v1597_v1  ;;  %1269 = vmatprep.mubr.msk.f32.mxu1 %vm1596_vm0, %v1597_v1  ;;  %v1322_v7 = vpack.c.bf16 %v246_v6, %v245_v4  ;;  %v242_v8 = vld [vmem:[%s209_s8] sm:$0xff]  ;;  %s1600_s27 = smov 88   ;;  %s1601_s30 = smov 120   ;;  %vm329_vm2 = vcmask 64512   ;;  %v322_v17 = vshrl.u32 %v321_v16, 7  ;;  %v324_v18 = vand.u32 127, %v321_v16 }
  0x6c   : > { %1320 = vmatpush3.bf16.msra.mxu0 %v1319_v5  ;;  %s1602_s5 = smov 80   ;;  %s1603_s6 = smov 72   ;;  %vm1007_vm4 = vcmask 130048   ;;  %vm1009_vm5 = vcmask 195584  }
  0x6d   : > { %1321 = vmatprep.subr.bf16.mxu0 %v1595_v0  ;;  %vm325_vm3 = vcmp.le.s32.totalorder %v324_v18, %v322_v17  ;;  %s1604_s26 = smov 112   ;;  %s1605_s10 = smov 104   ;;  %v1011_v17 = vld [vmem:[#allocation7] sm:$0xff]  ;;  %v1012_v18 = vld [vmem:[#allocation7 + $0x8] sm:$0xff] }
  0x6e   : > { %s1606_s24 = smov 56   ;;  %s1607_s20 = smov 48  }
  0x6f   : > { %s1608_s28 = smov 40   ;;  %s1609_s11 = smov 8  }
  0x70   : > { %1323 = vmatpush3.bf16.msra.mxu0 %v1322_v7  ;;  %s1610_s12 = smov 16   ;;  %s1611_s7 = smov 24  }
  0x71   : > { %1287 = vmatprep.subr.mxu0 %v1597_v1  ;;  %p1969_p0 = scmp.ne.s32.totalorder %s1964_s13, 0 }
  0x73   : > { %1265 = vmatmul.mubr.msk.f32.vlgmr.msra.gmra.mrb[0].mxu0 %vm247_vm1, %v242_v8 }
  0x74   : > { %1289 = vmatprep.mubr.msk.f32.mxu0 %vm1596_vm0, %v1597_v1 }
 0x146   : > { %v1832_v9 = vpop.f32.mrb[0].mxu0 }
 0x147   : > { %417 = vrot.lane.b32.xlu1 %v1832_v9, %s1598_s21  ;;  %327 = vrot.lane.b32.xlu0 %v1832_v9, %s1599_s23  ;;  %v1266_v10 = vpop.f32.mrb[1].mxu0  ;;  %s1227_s23 = sshll.u32 %s1659_s19, 7 }
 0x14b   : > { %495 = vrot.lane.b32.xlu1 %v1832_v9, %s1600_s27  ;;  %s241_s27 = scalar_lea.vmem [#allocation8], %s1207_s25  ;;  %s1612_s25 = smov [#allocation8]  }
 0x14f   : > { %493 = vrot.lane.b32.xlu1 %v1832_v9, %s1601_s30  ;;  %s1110_s30 = sshll.u32 %s241_s27, 4  ;;  %s1908_s30 = int_to_ptr.vmem [resolvable:$true] %s1110_s30 }
 0x150   : > { %s1518_s19 = scalar_lea.vmem %s1908_s30, 128 }
 0x151   : > { %p1519_p11 = scmp.ne.s32.totalorder %s1908_s30, %s1518_s19 }
 0x153   : > { %662 = vrot.lane.b32.xlu1 %v1832_v9, %s1602_s5  ;;  %p1520_p1 = pnand %p1519_p11, %p1969_p0 }
 0x155   : > { %p1521_p3 = pneg %p1520_p1 }
 0x1b9   : > { %v418_v11 = vpop.permute.xlu1 %417  ;;  %v328_v12 = vpop.permute.xlu0 %327 }
 0x1ba   : > { %1268 = vmatpush3.xpose.msk.msra.mxu1 %vm329_vm2, %v328_v12 }
 0x1bb   : > { %1272 = vmatprep.subr.mxu1 %v1597_v1 }
 0x1bd   : > { %v496_v13 = vpop.permute.xlu1 %495  ;;  %1270 = vmatmul.mubr.msk.f32.vlgmr.msra.gmra.mrb[0].mxu1 %vm329_vm2, %v1832_v9 }
 0x1be   : > { %1273 = vmatpush3.msra.mxu1 %v418_v11  ;;  %1274 = vmatprep.mubr.msk.f32.mxu1 %vm1596_vm0, %v1597_v1 }
 0x1bf   : > { %1277 = vmatprep.subr.mxu1 %v1597_v1 }
 0x1c1   : > { %v494_v14 = vpop.permute.xlu1 %493 }
 0x1c5   : > { %v663_v15 = vpop.permute.xlu1 %662 }
 0x1c6   : > { %1288 = vmatpush3.xpose.msk.msra.mxu0 %vm329_vm2, %v663_v15 }
 0x1c7   : > { %1297 = vmatprep.subr.mxu0 %v1597_v1 }
 0x290   : > { %v400_v19 = vpop.f32.mrb[0].mxu1 }
 0x291   : > { %v404_v20 = vmul.f32 0.17677669, %v400_v19  ;;  %v1271_v21 = vpop.f32.mrb[1].mxu1  ;;  %v1325_v19 = vpack.c.bf16 %v1012_v18, %v1011_v17 }
 0x292   : > { %v1014_v21 = vld [vmem:[#allocation7 + $0x18] sm:$0xff] }
 0x293   : > { %v405_v22 = vsel %vm325_vm3, %v404_v20, -1e+30  ;;  %v1013_v20 = vld [vmem:[#allocation7 + $0x10] sm:$0xff] }
 0x294   : > { %v406_v23 = vsel %vm329_vm2, %v405_v22, -inf }
 0x295   : > { %407 = vmax.xlane.f32.xlu0 %v406_v23 }
 0x2ab   : > { %829 = vrot.lane.b32.xlu0 %v1832_v9, %s1603_s6 }
 0x322   : > { %v408_v24 = vpop.xlane.xlu0 %407 }
 0x323   : > { %v409_v25 = vsub.f32 %v405_v22, %v408_v24  ;;  %v1328_v22 = vpack.c.bf16 %v1014_v21, %v1013_v20 }
 0x325   : > { %v410_v26 = vmul.f32 1.442695, %v409_v25 }
 0x326   : > { %v830_v31 = vpop.permute.xlu0 %829 }
 0x327   : > { %1416 = vpow2.f32 %v410_v26 }
 0x331   : > { %v1417_v27 = vpop.eup %1416 }
 0x332   : > { %v412_v28 = vsel %vm329_vm2, %v1417_v27, 0.0 }
 0x333   : > { %413 = vadd.xlane.f32.xlu1 %v412_v28 }
 0x344   : > { %660 = vrot.lane.b32.xlu1 %v1832_v9, %s1604_s26  ;;  %s1906_s26 = scalar_lea.hbm %s1955_s4, %s1227_s23 }
 0x348   : > { %827 = vrot.lane.b32.xlu1 %v1832_v9, %s1605_s10  ;;  %s1097_s10 = scalar_lea.sflag [#allocation4], %s1807_s29 }
 0x3c0   : > { %v414_v29 = vpop.xlane.xlu1 %413 }
 0x3c1   : > { %1418 = vrcp.f32 %v414_v29 }
 0x3c4   : > { %v661_v30 = vpop.permute.xlu1 %660 }
 0x3c5   : > { %1290 = vmatmul.mubr.msk.f32.vlgmr.msra.gmra.mrb[2].mxu0 %vm329_vm2, %v661_v30 }
 0x3c6   : > { %1298 = vmatpush3.xpose.msk.msra.mxu0 %vm329_vm2, %v830_v31  ;;  %1299 = vmatprep.mubr.msk.f32.mxu0 %vm1596_vm0, %v1597_v1 }
 0x3c7   : > { %1324 = vmatprep.subr.bf16.mxu0 %v1595_v0 }
 0x3c8   : > { %v828_v32 = vpop.permute.xlu1 %827 }
 0x3c9   : > { %1300 = vmatmul.mubr.msk.f32.vlgmr.msra.gmra.mrb[4].mxu0 %vm329_vm2, %v828_v32 }
 0x3ca   : > { %1315 = vmatprep.mubr.msk.f32.mxu0 %vm1596_vm0, %v1597_v1  ;;  %1326 = vmatpush3.bf16.msra.mxu0 %v1325_v19 }
 0x3cb   : > { %v1419_v33 = vpop.eup %1418  ;;  %1327 = vmatprep.subr.bf16.mxu0 %v1595_v0 }
 0x3cc   : > { %v416_v34 = vmul.f32 %v1419_v33, %v1417_v27  ;;  %v1224_v33 = vld [vmem:[%s1954_s3] ss:$0 sm:$0xff] }
 0x3ce   : > { %1275 = vmatmul.mubr.msk.f32.vlgmr.msra.gmra.mrb[2].mxu1 %vm329_vm2, %v416_v34  ;;  %1329 = vmatpush3.bf16.msra.mxu0 %v1328_v22 }
 0x3cf   : > { %1278 = vmatpush3.xpose.msk.msra.mxu1 %vm329_vm2, %v496_v13  ;;  %1279 = vmatprep.mubr.msk.f32.mxu1 %vm1596_vm0, %v1597_v1 }
 0x3d0   : > { %1282 = vmatprep.subr.mxu1 %v1597_v1 }
 0x3d2   : > { %1280 = vmatmul.mubr.msk.f32.vlgmr.msra.gmra.mrb[4].mxu1 %vm329_vm2, %v494_v14 }
 0x3d3   : > { %1284 = vmatprep.mubr.msk.f32.mxu1 %vm1596_vm0, %v1597_v1 }
 0x498   : > { %v734_v35 = vpop.f32.mrb[2].mxu0 }
 0x499   : > { %v738_v36 = vmul.f32 0.17677669, %v734_v35  ;;  %v1291_v37 = vpop.f32.mrb[3].mxu0 }
 0x49b   : > { %v739_v38 = vsel %vm325_vm3, %v738_v36, -1e+30 }
 0x49c   : > { %v901_v39 = vpop.f32.mrb[4].mxu0  ;;  %v740_v40 = vsel %vm329_vm2, %v739_v38, -inf }
 0x49d   : > { %741 = vmax.xlane.f32.xlu0 %v740_v40  ;;  %v1301_v41 = vpop.f32.mrb[5].mxu0  ;;  %v905_v45 = vmul.f32 0.17677669, %v901_v39 }
 0x49f   : > { %v906_v50 = vsel %vm325_vm3, %v905_v45, -1e+30 }
 0x4a0   : > { %v907_v51 = vsel %vm329_vm2, %v906_v50, -inf }
 0x4a1   : > { %v1872_v42 = vpop.f32.mrb[2].mxu1 }
 0x4a2   : > { %v1276_v43 = vpop.f32.mrb[3].mxu1 }
 0x4a5   : > { %v567_v44 = vpop.f32.mrb[4].mxu1 }
 0x4a6   : > { %v571_v46 = vmul.f32 0.17677669, %v567_v44  ;;  %v1281_v47 = vpop.f32.mrb[5].mxu1 }
 0x4a8   : > { %v572_v48 = vsel %vm325_vm3, %v571_v46, -1e+30 }
 0x4a9   : > { %v573_v49 = vsel %vm329_vm2, %v572_v48, -inf }
 0x4aa   : > { %574 = vmax.xlane.f32.xlu1 %v573_v49 }
 0x4ae   : > { %908 = vmax.xlane.f32.xlu1 %v907_v51 }
 0x52a   : > { %v742_v52 = vpop.xlane.xlu0 %741 }
 0x52b   : > { %v743_v53 = vsub.f32 %v739_v38, %v742_v52 }
 0x52d   : > { %v744_v54 = vmul.f32 1.442695, %v743_v53 }
 0x52f   : > { %1420 = vpow2.f32 %v744_v54 }
 0x537   : > { %v575_v55 = vpop.xlane.xlu1 %574 }
 0x538   : > { %v576_v63 = vsub.f32 %v572_v48, %v575_v55 }
 0x539   : > { %v1421_v56 = vpop.eup %1420 }
 0x53a   : > { %v746_v57 = vsel %vm329_vm2, %v1421_v56, 0.0  ;;  %v577_v2 = vmul.f32 1.442695, %v576_v63 }
 0x53b   : > { %747 = vadd.xlane.f32.xlu1 %v746_v57  ;;  %v909_v58 = vpop.xlane.xlu1 %908 }
 0x53c   : > { %v910_v59 = vsub.f32 %v906_v50, %v909_v58 }
 0x53e   : > { %v911_v60 = vmul.f32 1.442695, %v910_v59 }
 0x540   : > { %1422 = vpow2.f32 %v911_v60 }
 0x541   : > { %1424 = vpow2.f32 %v577_v2 }
 0x54a   : > { %v1423_v61 = vpop.eup %1422 }
 0x54b   : > { %v913_v62 = vsel %vm329_vm2, %v1423_v61, 0.0  ;;  %v1425_v3 = vpop.eup %1424 }
 0x54c   : > { %584 = vrot.lane.b32.xlu1 %v1832_v9, %s1606_s24  ;;  %914 = vadd.xlane.f32.xlu0 %v913_v62  ;;  %v579_v4 = vsel %vm329_vm2, %v1425_v3, 0.0  ;;  %s1522_s24 = sshll.u32 %s1612_s25, 4  ;;  %s1523_s24 = int_to_ptr.vmem [resolvable:$false] %s1522_s24 }
 0x54d   : > { %p1525_p7 = scmp.lt.s32.totalorder %s1908_s30, %s1523_s24 }
 0x562   : > { %751 = vrot.lane.b32.xlu0 %v1832_v9, %s1607_s20  ;;  %s1524_s20 = scalar_lea.vmem %s1523_s24, 256 }
 0x563   : > { %p1526_p9 = scmp.lt.s32.totalorder %s1524_s20, %s1518_s19 }
 0x565   : > { %p1527_p12 = por %p1526_p9, %p1525_p7 }
 0x567   : > { %p1528_p2 = pnand %p1527_p12, %p1521_p3 }
 0x570   : > { %580 = vadd.xlane.f32.xlu1 %v579_v4 }
 0x581   : > { %918 = vrot.lane.b32.xlu1 %v1832_v9, %s1608_s28 }
 0x5c8   : > { %v748_v5 = vpop.xlane.xlu1 %747 }
 0x5cc   : > { %v585_v6 = vpop.permute.xlu1 %584 }
 0x5cd   : > { %1283 = vmatpush3.msra.mxu1 %v585_v6 }
 0x5ce   : > { %1292 = vmatprep.subr.mxu1 %v1597_v1 }
 0x5d9   : > { %v915_v8 = vpop.xlane.xlu0 %914 }
 0x5dd   : > { %v752_v13 = vpop.permute.xlu0 %751 }
 0x5fd   : > { %v581_v7 = vpop.xlane.xlu1 %580 }
 0x5fe   : > { %1426 = vrcp.f32 %v581_v7 }
 0x5ff   : > { %1428 = vrcp.f32 %v748_v5 }
 0x600   : > { %1430 = vrcp.f32 %v915_v8 }
 0x601   : > { %v919_v15 = vpop.permute.xlu1 %918 }
 0x608   : > { %v1427_v10 = vpop.eup %1426 }
 0x609   : > { %v583_v11 = vmul.f32 %v1427_v10, %v1425_v3  ;;  %v1429_v12 = vpop.eup %1428 }
 0x60a   : > { %v750_v9 = vmul.f32 %v1429_v12, %v1421_v56  ;;  %v1431_v14 = vpop.eup %1430 }
 0x60b   : > { %1285 = vmatmul.mubr.msk.f32.vlgmr.msra.gmra.mrb[6].mxu1 %vm329_vm2, %v583_v11  ;;  %v917_v16 = vmul.f32 %v1431_v14, %v1423_v61 }
 0x60c   : > { %1293 = vmatpush3.msra.mxu1 %v752_v13  ;;  %1294 = vmatprep.mubr.msk.f32.mxu1 %vm1596_vm0, %v1597_v1 }
 0x60d   : > { %1302 = vmatprep.subr.mxu1 %v1597_v1 }
 0x60f   : > { %1295 = vmatmul.mubr.msk.f32.vlgmr.msra.gmra.mrb[8].mxu1 %vm329_vm2, %v750_v9 }
 0x610   : > { %1303 = vmatpush3.msra.mxu1 %v919_v15  ;;  %1304 = vmatprep.mubr.msk.f32.mxu1 %vm1596_vm0, %v1597_v1 }
 0x613   : > { %1305 = vmatmul.mubr.msk.f32.vlgmr.msra.gmra.mrb[10].mxu1 %vm329_vm2, %v917_v16 }
 0x6de   : > { %v656_v23 = vpop.f32.mrb[6].mxu1 }
 0x6df   : > { %995 = vrot.lane.b32.xlu1 %v656_v23, %s1609_s11  ;;  %v1286_v24 = vpop.f32.mrb[7].mxu1 }
 0x6e2   : > { %v823_v25 = vpop.f32.mrb[8].mxu1 }
 0x6e3   : > { %999 = vrot.lane.b32.xlu0 %v823_v25, %s1610_s12  ;;  %v1296_v1 = vpop.f32.mrb[9].mxu1 }
 0x6e6   : > { %v990_v26 = vpop.f32.mrb[10].mxu1 }
 0x6e7   : > { %1003 = vrot.lane.b32.xlu1 %v990_v26, %s1611_s7  ;;  %v1306_v27 = vpop.f32.mrb[11].mxu1 }
 0x751   : > { %v996_v28 = vpop.permute.xlu1 %995 }
 0x752   : > { %v1006_v29 = vsel %vm329_vm2, %v1872_v42, %v996_v28 }
 0x755   : > { %v1000_v0 = vpop.permute.xlu0 %999 }
 0x756   : > { %v1008_v30 = vsel %vm1007_vm4, %v1006_v29, %v1000_v0 }
 0x759   : > { %v1004_v31 = vpop.permute.xlu1 %1003 }
 0x75a   : > { %v1010_v32 = vsel %vm1009_vm5, %v1008_v30, %v1004_v31 }
 0x75b   : > { %1316 = vmatmul.mubr.msk.f32.vlgmr.msra.gmra.mrb[6].mxu0 %vm247_vm1, %v1010_v32 }
 0x82e   : > { %v1091_v34 = vpop.f32.mrb[6].mxu0 }
 0x82f   : > { %v1092_v35 = vadd.f32 %v1224_v33, %v1091_v34  ;;  %v1317_v36 = vpop.f32.mrb[7].mxu0 }
 0x831   : > { %1095 = vst.msk [vmem:[%s241_s27] sm:$0xff] %vm247_vm1, %v1092_v35 }
 0x832   : > { %1531 = shalt.err (!%p1528_p2)
}
 0x833   : > { %s1532_s29 = scalar_lea.hbm %s1906_s26, 128  ;;  %s1536_s12 = scalar_lea.hbm %s1955_s4, 256 }
 0x834   : > { %p1533_p13 = scmp.ne.s32.totalorder %s1906_s26, %s1532_s29  ;;  %p1537_p4 = scmp.lt.u32.totalorder %s1906_s26, %s1955_s4 }
 0x835   : > { %p1538_p5 = scmp.lt.u32.totalorder %s1536_s12, %s1532_s29  ;;  %p1540_p11 = scmp.lt.u32.totalorder %s1532_s29, %s1906_s26 }
 0x836   : > { %p1534_p6 = pnand %p1533_p13, %p1969_p0 }
 0x837   : > { %p1539_p8 = por %p1538_p5, %p1537_p4 }
 0x838   : > { %p1535_p10 = pneg %p1534_p6 }
 0x839   : > { %p1541_p1 = por %p1540_p11, %p1539_p8 }
 0x83b   : > { %p1542_p3 = pnand %p1541_p1, %p1535_p10 }
 0x83d   : > { %1545 = shalt.err (!%p1542_p3)
}
 0x83e   : > { %1340 = dma.vmem_to_hbm [thread:$0]  (%p1969_p0), %s1908_s30, 128, %s1906_s26, %s1097_s10  }
 0x83f PF: > { %s1122_s21 = sand.u32 1, %s1576_s15   ;;  %p1970_p7 = scmp.ne.s32.totalorder %s1960_s22, 0 }
 0x840   : > { %p1971_p9 = scmp.ge.s32.totalorder %s1588_s18, 2  ;;  %s1123_s23 = scalar_lea.sflag [#allocation4], %s1122_s21 }
 0x842   : > { %p1354_p12 = pnand %p1971_p9, %p1970_p7 }
 0x844   : > { %1571 = dma.done.wait (!%p1354_p12), %s1123_s23, 128  }
 0x845   : > { %1573 = vsyncadd (!%p1354_p12), %s1123_s23, 4294967168  ;;  %p18_p2 = scmp.ge.s32.totalorder %s1748_s9, 4   ;;  %s1972_s15 = smov %s1580_s16 }
 0x846   : > { %s1973_s16 = smov %s1584_s17  ;;  %s1974_s17 = smov %s1764_s14 }
 0x847   : > { %s1975_s18 = smov %s1748_s9  ;;  %20 = sbr.rel (!%p18_p2) target bundleno = 6 (0x6), region = 89 }
 0x84e   :  { %1128 = vsyncpa [#allocation3], 1 }
 0x84f   :  { %1130 = vsyncpa [#allocation3 + $0x1], 1 }
 0x850   :  { %1131 = vsyncpa [#allocation6], 1 }
 0x851   :  { %1132 = vsyncpa [#allocation4], 1 }
 0x852   :  { %1134 = vsyncpa [#allocation4 + $0x1], 1 }

</bundles_post_ra>
